<compile_context>
chip_gen: v7x
topology: tpu7x:2x2x1
jax: 0.10.0
libtpu: 0.0.40
codegen_flags: <defaults>
</compile_context>

<pallas_src>
import functools

import jax
import jax.numpy as jnp
from jax.experimental import pallas as pl
from jax.experimental.pallas import tpu as pltpu


# Above the 16/32 MiB scoped defaults, comfortably below v7x's 64 MiB physical.
_VMEM_LIMIT_BYTES = 48 * 1024 * 1024


def _round_up(x, m):
    return ((x + m - 1) // m) * m


def _choose_tile_q(n):
    """Row-tile size: full rows if small, else a VMEM-budgeted multiple of 32."""
    n8 = _round_up(max(int(n), 1), 8)
    if n8 <= 256:
        return n8
    # budget ~ a few f32 (tile, N) temporaries + double-buffered int8 adj strip
    budget = 24 * 1024 * 1024
    per_row = n8 * (3 * 4 + 2 * 1)
    t = budget // max(per_row, 1)
    return int(max(32, min(512, (t // 32) * 32)))


def _proj_kernel(x_ref, w_ref, hc_ref, *, compute_dtype):
    # hc = x @ [W | pad | W@a1 | W@a2] -- one lane-dense MXU matmul, f32 accum.
    x = x_ref[...].astype(compute_dtype)
    w = w_ref[...].astype(compute_dtype)
    hc_ref[...] = jnp.dot(x, w, preferred_element_type=jnp.float32)


def _attn_kernel(f1_ref, f2_ref, adj_ref, h_ref, out_ref, *,
                 alpha, concat, compute_dtype, approx):
    # e_ij = leakyrelu(f1_i + f2_j): (T,1) + (1,N) broadcast, no transpose.
    e = f1_ref[...] + f2_ref[...]
    e = jnp.where(e > 0, e, alpha * e)

    # Mask non-edges (int8 adjacency mask) and row-softmax, all in f32.
    mask = adj_ref[...].astype(jnp.float32)
    att = jnp.where(mask > 0, e, jnp.float32(-9e15))
    att_max = jnp.max(att, axis=1, keepdims=True)
    p = jnp.exp(att - att_max)
    inv_den = pl.reciprocal(jnp.sum(p, axis=1, keepdims=True), approx=approx)
    att = p * inv_den

    # TODO(synk): F.dropout on the attention weights is identity in eval mode
    # (training=False) and is therefore not implemented.

    # h' = att @ h  -- MXU with (optionally) bf16 operands, f32 accumulation.
    hp = jnp.dot(att.astype(compute_dtype), h_ref[...].astype(compute_dtype),
                 preferred_element_type=jnp.float32)

    if concat:
        # ELU; clamp the exp argument so the unselected branch never overflows.
        hp = jnp.where(hp > 0, hp, jnp.exp(jnp.minimum(hp, 0.0)) - 1.0)

    out_ref[...] = hp.astype(out_ref.dtype)


def gat_forward(x, adj, W, a, *, alpha=0.2, concat=True, precise=False, tile_q=None):
    """GAT layer forward. x:(N,Fin), adj:(N,N), W:(Fin,Fout), a:(2*Fout,1).

    precise=True  -> f32 MXU operands + exact reciprocal (tight numerics)
    precise=False -> bf16 MXU operands + EUP approx reciprocal (fast path)
    """
    x = jnp.asarray(x, jnp.float32)
    adj = jnp.asarray(adj)
    W = jnp.asarray(W, jnp.float32)
    a = jnp.asarray(a, jnp.float32)

    N, Fin = x.shape
    Fout = W.shape[1]
    compute_dtype = jnp.float32 if precise else jnp.bfloat16

    # Fold the attention projections into the main matmul:
    #   f1 = h @ a1 = x @ (W @ a1),  f2 = h @ a2 = x @ (W @ a2).
    a1 = a[:Fout, :]
    a2 = a[Fout:, :]
    wa1 = W @ a1                    # (Fin, 1)
    wa2 = W @ a2                    # (Fin, 1)

    # Lane-dense padded feature dim; the last two columns carry f1 / f2.
    Fp = _round_up(Fout + 2, 128)
    Wcat = jnp.zeros((Fin, Fp), jnp.float32)
    Wcat = Wcat.at[:, :Fout].set(W)
    Wcat = Wcat.at[:, Fp - 2:Fp - 1].set(wa1)
    Wcat = Wcat.at[:, Fp - 1:Fp].set(wa2)

    # Row tiling / padding.
    if tile_q is None:
        tile_q = _choose_tile_q(N)
    tile_q = int(tile_q)
    n8 = _round_up(N, 8)
    if tile_q >= n8:
        tile_q = n8                                        # single full-row tile
    else:
        tile_q = min(max(32, _round_up(tile_q, 32)), n8)   # int8-friendly sublanes
    Np = _round_up(N, tile_q)
    grid = (Np // tile_q,)

    pad_rows = Np - N
    xp = jnp.pad(x, ((0, pad_rows), (0, 0)))
    adj_mask = jnp.pad((adj > 0).astype(jnp.int8), ((0, pad_rows), (0, pad_rows)))

    cparams = pltpu.CompilerParams(
        dimension_semantics=("parallel",),
        vmem_limit_bytes=_VMEM_LIMIT_BYTES,
    )

    # Pass 1: hc = xp @ Wcat (row-tiled, lane-dense output, f32 accumulate).
    hc = pl.pallas_call(
        functools.partial(_proj_kernel, compute_dtype=compute_dtype),
        out_shape=jax.ShapeDtypeStruct((Np, Fp), jnp.float32),
        grid=grid,
        in_specs=[
            pl.BlockSpec((tile_q, Fin), lambda i: (i, 0)),
            pl.BlockSpec((Fin, Fp), lambda i: (0, 0)),
        ],
        out_specs=pl.BlockSpec((tile_q, Fp), lambda i: (i, 0)),
        compiler_params=cparams,
    )(xp, Wcat)

    f1 = hc[:, Fp - 2:Fp - 1]                  # (Np, 1)  f1_i for every node
    f2_row = hc[:, Fp - 1:Fp].reshape(1, Np)   # (1, Np)  f2_j as a row vector

    # Pass 2: masked softmax attention + aggregation, row-tiled grid.
    out_pad = pl.pallas_call(
        functools.partial(_attn_kernel, alpha=float(alpha), concat=bool(concat),
                          compute_dtype=compute_dtype, approx=not precise),
        out_shape=jax.ShapeDtypeStruct((Np, Fp), jnp.float32),
        grid=grid,
        in_specs=[
            pl.BlockSpec((tile_q, 1), lambda i: (i, 0)),    # f1 rows of this tile
            pl.BlockSpec((1, Np), lambda i: (0, 0)),        # f2 (all nodes), resident
            pl.BlockSpec((tile_q, Np), lambda i: (i, 0)),   # int8 adj strip, streamed
            pl.BlockSpec((Np, Fp), lambda i: (0, 0)),       # h (all nodes), resident
        ],
        out_specs=pl.BlockSpec((tile_q, Fp), lambda i: (i, 0)),
        compiler_params=cparams,
    )(f1, f2_row, adj_mask, hc)

    # TODO(synk): for very large N, add a second "arbitrary" grid axis over
    # column tiles with flash-style online softmax to bound VMEM independent of N.
    return out_pad[:N, :Fout]


def _reference(x, adj, W, a, alpha, concat):
    # Pure-JAX reference mirroring the PyTorch module exactly.
    h = x @ W
    N = h.shape[0]
    F_out = W.shape[1]
    a_input = jnp.concatenate(
        [jnp.tile(h, (1, N)).reshape(N * N, -1), jnp.tile(h, (N, 1))], axis=1
    ).reshape(N, N, 2 * F_out)
    e = (a_input @ a)[..., 0]
    e = jnp.where(e > 0, e, alpha * e)
    att = jnp.where(adj > 0, e, -9e15)
    att = jax.nn.softmax(att, axis=1)
    h_prime = att @ h
    if concat:
        return jnp.where(h_prime > 0, h_prime, jnp.exp(h_prime) - 1.0)
    return h_prime


if __name__ == "__main__":
    N, Fin, Fout = 8, 16, 32
    alpha, gain = 0.2, 1.414

    key = jax.random.PRNGKey(0)
    kx, kadj, kw, ka = jax.random.split(key, 4)

    # Deterministic xavier_uniform_-style init (gain=1.414), matching module shapes.
    bw = gain * (6.0 / (Fin + Fout)) ** 0.5
    W = jax.random.uniform(kw, (Fin, Fout), jnp.float32, -bw, bw)
    ba = gain * (6.0 / (2 * Fout + 1)) ** 0.5
    a = jax.random.uniform(ka, (2 * Fout, 1), jnp.float32, -ba, ba)

    x = jax.random.normal(kx, (N, Fin), jnp.float32)
    adj = (jax.random.uniform(kadj, (N, N)) > 0.5).astype(jnp.float32)
    adj = jnp.maximum(adj, jnp.eye(N, dtype=jnp.float32))   # ensure self-loops

    ref = _reference(x, adj, W, a, alpha, True)

    # Precise path (f32 MXU operands, exact reciprocal): tight correctness check.
    out_precise = jax.block_until_ready(
        gat_forward(x, adj, W, a, alpha=alpha, concat=True, precise=True))
    assert out_precise.shape == (N, Fout)
    assert jnp.allclose(out_precise, ref, atol=1e-3, rtol=1e-3), "precise path mismatch"

    # Fast path (bf16 MXU operands, approx reciprocal): ballpark check.
    out_fast = jax.block_until_ready(
        gat_forward(x, adj, W, a, alpha=alpha, concat=True, precise=False))
    assert out_fast.shape == (N, Fout)
    assert jnp.allclose(out_fast, ref, atol=1e-1, rtol=1e-1), "bf16 path mismatch"

    # Multi-tile grid path (row tiling + ragged-N padding exercised).
    N2 = 48
    kx2, kadj2 = jax.random.split(jax.random.PRNGKey(1))
    x2 = jax.random.normal(kx2, (N2, Fin), jnp.float32)
    adj2 = (jax.random.uniform(kadj2, (N2, N2)) > 0.7).astype(jnp.float32)
    adj2 = jnp.maximum(adj2, jnp.eye(N2, dtype=jnp.float32))
    ref2 = _reference(x2, adj2, W, a, alpha, True)
    out2 = jax.block_until_ready(
        gat_forward(x2, adj2, W, a, alpha=alpha, concat=True, precise=True, tile_q=32))
    assert out2.shape == (N2, Fout)
    assert jnp.allclose(out2, ref2, atol=1e-3, rtol=1e-3), "tiled path mismatch"

    print("KERNEL_OK")
</pallas_src>

<mosaic_0001>
module attributes {stable_mosaic.version = 11 : i64} {
  func.func @_proj_kernel(%arg0: i32, %arg1: memref<8x16xf32, #tpu.memory_space<vmem>>, %arg2: memref<16x128xf32, #tpu.memory_space<vmem>>, %arg3: memref<8x128xf32, #tpu.memory_space<vmem>>) attributes {dimension_semantics = [#tpu.dimension_semantics<parallel>], iteration_bounds = array<i64: 1>, scalar_prefetch = 0 : i64, scratch_operands = 0 : i64, tpu.core_type = #tpu.core_type<tc>, window_params = [{transform_indices = @transform_0, window_bounds = array<i64: 8, 16>}, {pipeline_mode = #tpu.pipeline_mode<synchronous>, transform_indices = @transform_1, window_bounds = array<i64: 16, 128>}, {transform_indices = @transform_2, window_bounds = array<i64: 8, 128>}]} {
    %c0 = arith.constant 0 : index
    %c0_0 = arith.constant 0 : index
    %0 = vector.load %arg1[%c0, %c0_0] : memref<8x16xf32, #tpu.memory_space<vmem>>, vector<8x16xf32>
    %c0_1 = arith.constant 0 : index
    %c0_2 = arith.constant 0 : index
    %1 = vector.load %arg2[%c0_1, %c0_2] : memref<16x128xf32, #tpu.memory_space<vmem>>, vector<16x128xf32>
    %cst = arith.constant dense<0.000000e+00> : vector<8x128xf32>
    %2 = tpu.matmul %0, %1, %cst {dimension_numbers = #tpu.dot_dimension_numbers<[1], [0], [0], [1], [0, 0, 1, 1], [], []>} : vector<8x16xf32>, vector<16x128xf32>, vector<8x128xf32> -> vector<8x128xf32>
    %c0_3 = arith.constant 0 : index
    %c0_4 = arith.constant 0 : index
    %3 = vector.load %arg3[%c0_3, %c0_4] : memref<8x128xf32, #tpu.memory_space<vmem>>, vector<8x128xf32>
    tpu.vector_store %arg3[%c0_3, %c0_4], %2 {strides = array<i32>} : memref<8x128xf32, #tpu.memory_space<vmem>>, vector<8x128xf32>,
    return
  }
  func.func @transform_0(%arg0: i32) -> (i32, i32) {
    %c0_i32 = arith.constant 0 : i32
    %c0_i32_0 = arith.constant 0 : i32
    return %arg0, %c0_i32 : i32, i32
  }
  func.func @transform_1(%arg0: i32) -> (i32, i32) {
    %c0_i32 = arith.constant 0 : i32
    %c0_i32_0 = arith.constant 0 : i32
    %c0_i32_1 = arith.constant 0 : i32
    return %c0_i32, %c0_i32_0 : i32, i32
  }
  func.func @transform_2(%arg0: i32) -> (i32, i32) {
    %c0_i32 = arith.constant 0 : i32
    %c0_i32_0 = arith.constant 0 : i32
    return %arg0, %c0_i32 : i32, i32
  }
}

</mosaic_0001>

<bundles_post_ra>
// kernel: tpu_custom_call.1
= control target key start
LH: loop header
LB: loop body
LE: loop exit
PB: predicated region body
PF: predicated region fallthrough
CT: control target
= control target key end

     0   :  { %7 = vsyncpa [#allocation3], 0  ;;  %s292_s0 = inlined_call_operand.hbm [shape: f32[8,16], index: 0, kind: input, shape index: {}]   ;;  %s293_s1 = inlined_call_operand.hbm [shape: f32[16,128], index: 1, kind: input, shape index: {}]   ;;  %s294_s2 = inlined_call_operand.hbm [shape: f32[8,128], index: 2, kind: output, shape index: {}]  }
   0x1   :  { %8 = vsyncpa [#allocation6], 0 }
   0x2   :  { %9 = vsyncpa [#allocation4], 0  ;;  %s226_s9 = smov [#allocation2]   ;;  %s227_s11 = smov [#allocation5]  }
   0x3   :  { %s16_s10 = sshll.u32 %s226_s9, 4  ;;  %s25_s12 = sshll.u32 %s227_s11, 4  ;;  %s17_s10 = int_to_ptr.vmem [resolvable:$true] %s16_s10  ;;  %s249_s12 = int_to_ptr.vmem [resolvable:$true] %s25_s12 }
   0x4   :  { %s154_s15 = scalar_lea.hbm %s292_s0, 128 }
   0x5   :  { %p155_p0 = scmp.ne.s32.totalorder %s292_s0, %s154_s15  ;;  %p158_p1 = scmp.lt.u32.totalorder %s154_s15, %s292_s0 }
   0x7   :  { %p160_p2 = pnand %p158_p1, %p155_p0 }
   0x9   :  { %163 = shalt.err (!%p160_p2)
}
   0xa   :  { %s164_s20 = scalar_lea.vmem %s17_s10, 128  ;;  %p169_p4 = scmp.lt.s32.totalorder %s17_s10, %s17_s10 }
   0xb   :  { %p165_p3 = scmp.ne.s32.totalorder %s17_s10, %s164_s20  ;;  %p170_p5 = scmp.lt.s32.totalorder %s164_s20, %s164_s20 }
   0xd   :  { %p171_p6 = por %p170_p5, %p169_p4 }
   0xf   :  { %p172_p7 = pnand %p171_p6, %p165_p3 }
  0x11   :  { %175 = shalt.err (!%p172_p7)
}
  0x12   :  { %19 = dma.hbm_to_vmem [thread:$0]  %s292_s0, 128, %s17_s10, [#allocation3]  }
  0x13   :  { %s176_s25 = scalar_lea.hbm %s293_s1, 256 }
  0x14   :  { %p177_p8 = scmp.ne.s32.totalorder %s293_s1, %s176_s25  ;;  %p180_p9 = scmp.lt.u32.totalorder %s176_s25, %s293_s1 }
  0x16   :  { %p182_p10 = pnand %p180_p9, %p177_p8 }
  0x18   :  { %185 = shalt.err (!%p182_p10)
}
  0x19   :  { %s186_s30 = scalar_lea.vmem %s249_s12, 256  ;;  %p191_p12 = scmp.lt.s32.totalorder %s249_s12, %s249_s12 }
  0x1a   :  { %p187_p11 = scmp.ne.s32.totalorder %s249_s12, %s186_s30  ;;  %p192_p13 = scmp.lt.s32.totalorder %s186_s30, %s186_s30 }
  0x1c   :  { %p193_p0 = por %p192_p13, %p191_p12 }
  0x1e   :  { %p194_p1 = pnand %p193_p0, %p187_p11 }
  0x20   :  { %197 = shalt.err (!%p194_p1)
}
  0x21   :  { %s228_s0 = smov 128   ;;  %s229_s3 = smov 8  }
  0x22   :  { %31 = dma.hbm_to_vmem [thread:$0]  %s293_s1, 256, %s249_s12, [#allocation6], %s228_s0, %s228_s0, %s229_s3  }
  0x23   :  { %220 = dma.done.wait [#allocation3], 128  }
  0x24   :  { %221 = vsyncadd [#allocation3], 4294967168 }
  0x25   :  { %222 = dma.done.wait [#allocation6], 256  }
  0x26   :  { %223 = vsyncadd [#allocation6], 4294967040  ;;  %v230_v0 = vmov 0.0|0.0   ;;  %vm231_vm0 = vmmov 0   ;;  %v232_v1 = vmov 0.0   ;;  %v39_v2 = vld [vmem:[#allocation5] sm:$0xff] }
  0x27   :  { %143 = vmatprep.subr.bf16.mxu0 %v230_v0  ;;  %140 = vmatprep.mubr.msk.f32.mxu0 %vm231_vm0, %v232_v1  ;;  %v40_v3 = vld [vmem:[#allocation5 + $0x8] sm:$0xff]  ;;  %v38_v5 = vld [vmem:[#allocation2] sm:$0xff]  ;;  %vm41_vm1 = vcmask 130048   ;;  %s233_s6 = smov [#allocation7]  }
  0x28   :  { %v144_v4 = vpack.c.bf16 %v40_v3, %v39_v2  ;;  %s122_s7 = sshll.u32 %s233_s6, 4  ;;  %s123_s7 = int_to_ptr.vmem [resolvable:$true] %s122_s7 }
  0x29   :  { %s198_s1 = scalar_lea.vmem %s123_s7, 128  ;;  %p203_p3 = scmp.lt.s32.totalorder %s123_s7, %s123_s7 }
  0x2a   :  { %145 = vmatpush3.bf16.msra.mxu0 %v144_v4  ;;  %p199_p2 = scmp.ne.s32.totalorder %s123_s7, %s198_s1  ;;  %p204_p4 = scmp.lt.s32.totalorder %s198_s1, %s198_s1 }
  0x2c   :  { %p205_p5 = por %p204_p4, %p203_p3 }
  0x2d   :  { %141 = vmatmul.mubr.msk.f32.vlgmr.msra.gmra.mrb[0].mxu0 %vm41_vm1, %v38_v5 }
  0x2e   :  { %p206_p6 = pnand %p205_p5, %p199_p2 }
 0x100   :  { %v111_v6 = vpop.f32.mrb[0].mxu0 }
 0x101   :  { %115 = vst [vmem:[#allocation7] sm:$0xff] %v111_v6  ;;  %v142_v7 = vpop.f32.mrb[1].mxu0 }
 0x102   :  { %209 = shalt.err (!%p206_p6)
}
 0x103   :  { %s210_s10 = scalar_lea.hbm %s294_s2, 128 }
 0x104   :  { %p211_p7 = scmp.ne.s32.totalorder %s294_s2, %s210_s10  ;;  %p214_p8 = scmp.lt.u32.totalorder %s210_s10, %s294_s2 }
 0x106   :  { %p216_p9 = pnand %p214_p8, %p211_p7 }
 0x108   :  { %219 = shalt.err (!%p216_p9)
}
 0x109   :  { %125 = dma.vmem_to_hbm [thread:$0]  %s123_s7, 128, %s294_s2, [#allocation4]  }
 0x10a   :  { %224 = dma.done.wait [#allocation4], 128  }
 0x10b   :  { %225 = vsyncadd [#allocation4], 4294967168 }
 0x10c   :  { %129 = vsyncpa [#allocation3], 1 }
 0x10d   :  { %130 = vsyncpa [#allocation6], 1 }
 0x10e   :  { %131 = vsyncpa [#allocation4], 1 }

</bundles_post_ra>
